<compile_context>
chip_gen: v6e
topology: v6e:2x2x1
jax: 0.10.0
libtpu: 0.0.40
codegen_flags: <defaults>
</compile_context>

<pallas_src>
import jax
import jax.numpy as jnp
import numpy as np
from jax.experimental import pallas as pl
from jax.experimental.pallas import tpu as pltpu


# ----------------------------- fused kernel ---------------------------------

def _make_fused_kernel(num_layers, kernel_size, chans, T):
    """chans: list of (Cin, Cout) per conv block (static python ints)."""
    pad = kernel_size // 2

    def kernel(len_ref, x_ref, *args):
        # args: [dw0, pw0, pb0, g0, be0, dw1, ...] + [proj_w, proj_b, o_ref]
        layer_refs = args[:5 * num_layers]
        projw_ref, projb_ref, o_ref = args[5 * num_layers:]

        b = pl.program_id(0)
        length = len_ref[b]                                   # scalar from SMEM

        # valid-time (prefix) mask rebuilt in-kernel from the length scalar.
        # NOTE: assumes the provided mask is a contiguous prefix mask.
        t_idx = jax.lax.broadcasted_iota(jnp.int32, (T, 1), 0)
        len_mask = (t_idx < length).astype(jnp.float32)       # (T, 1)

        h = x_ref[0].astype(jnp.float32)                      # (T, Cin0) f32

        for l in range(num_layers):
            Cin, Cout = chans[l]
            dw_ref, pw_ref, pb_ref, g_ref, be_ref = layer_refs[5 * l:5 * l + 5]

            # --- depthwise 'same' conv: XLU rolls + VPU scale-accumulate ----
            acc = jnp.zeros((T, Cin), jnp.float32)
            for j in range(kernel_size):
                s = pad - j                                   # shifted[t] = h[t - s]
                if s == 0:
                    shifted = h
                else:
                    shifted = pltpu.roll(h, shift=s % T, axis=0)
                    if s > 0:                                 # zero wrapped head rows
                        valid = t_idx >= s
                    else:                                     # zero wrapped tail rows
                        valid = t_idx < (T + s)
                    shifted = jnp.where(valid, shifted, 0.0)
                acc = acc + shifted * dw_ref[j:j + 1, :]      # (T,Cin)*(1,Cin)

            # --- pointwise conv: one bf16 MXU matmul, f32 accumulate --------
            y = jnp.dot(acc.astype(jnp.bfloat16), pw_ref[...],
                        preferred_element_type=jnp.float32)   # (T, Cout)
            y = y + pb_ref[...]                               # + (1, Cout) bias
            y = jnp.maximum(y, 0.0)                           # ReLU

            # --- LayerNormWithDim(dim=1): fused single-pass stats, f32 ------
            inv_c = 1.0 / Cout
            mean = jnp.sum(y, axis=-1, keepdims=True) * inv_c
            ex2 = jnp.sum(y * y, axis=-1, keepdims=True) * inv_c
            var = jnp.maximum(ex2 - mean * mean, 0.0)
            y = (y - mean) * jax.lax.rsqrt(var + 1e-12)
            y = y * g_ref[...] + be_ref[...]

            h = y * len_mask                                  # mask after block

        # final Linear(inter_dim, 1): VPU mul + lane reduce, then a single
        # (T,1)->(1,T) transpose so the output store is lane-dense.
        proj = jnp.sum(h * projw_ref[...], axis=-1, keepdims=True) + projb_ref[0, 0]
        o_ref[0] = jnp.transpose(proj).astype(o_ref.dtype)    # (1, T) row

    return kernel


# ----------------------------- wrapper ---------------------------------------

def duration_predictor_forward(params, x, lengths, mask, kernel_size):
    """x: (B, Tmax, H), lengths: (B,) [unused, as in torch forward],
    mask: (B, 1, Tmax) prefix padding mask -> log-durations (B, Tmax)."""
    del lengths
    B, T, dim = x.shape
    blocks = params["blocks"]
    num_layers = len(blocks)

    # valid lengths recovered from the prefix padding mask; consumed via SMEM
    lens = jnp.sum(mask, axis=(1, 2)).astype(jnp.int32)       # (B,)

    # activations travel in bf16 (production inputs would already be bf16)
    if x.dtype != jnp.bfloat16:
        x = x.astype(jnp.bfloat16)

    chans = []
    flat = []
    cin = dim
    for (dw, pw, pb, g, be) in blocks:
        cout = pw.shape[1]
        flat += [dw.astype(jnp.float32),        # (K, Cin)   depthwise taps, VPU f32
                 pw.astype(jnp.bfloat16),       # (Cin,Cout) pointwise, MXU bf16
                 pb.astype(jnp.float32),        # (1, Cout)
                 g.astype(jnp.float32),         # (1, Cout)
                 be.astype(jnp.float32)]        # (1, Cout)
        chans.append((cin, cout))
        cin = cout
    clast = chans[-1][1]
    cmax = max([dim] + [co for _, co in chans])

    proj_w = params["proj_w"].reshape(1, -1).astype(jnp.float32)  # (1, Clast)
    proj_b = params["proj_b"].reshape(1, 1).astype(jnp.float32)   # (1, 1)

    in_specs = [pl.BlockSpec((1, T, dim), lambda b, L: (b, 0, 0))]
    for (ci, co) in chans:
        in_specs += [
            pl.BlockSpec((kernel_size, ci), lambda b, L: (0, 0)),
            pl.BlockSpec((ci, co), lambda b, L: (0, 0)),
            pl.BlockSpec((1, co), lambda b, L: (0, 0)),
            pl.BlockSpec((1, co), lambda b, L: (0, 0)),
            pl.BlockSpec((1, co), lambda b, L: (0, 0)),
        ]
    in_specs += [pl.BlockSpec((1, clast), lambda b, L: (0, 0)),
                 pl.BlockSpec((1, 1), lambda b, L: (0, 0))]

    kernel = _make_fused_kernel(num_layers, kernel_size, chans, T)

    # ---- explicit VMEM budget (v7x 64 MiB / v5e 16 MiB default safe) --------
    weight_bytes = sum(int(w.size) * w.dtype.itemsize for w in flat)
    weight_bytes += int(proj_w.size) * 4 + int(proj_b.size) * 4
    x_blk = T * dim * 2                 # bf16 input block
    out_blk = T * 4                     # f32 output row
    act_ws = 8 * T * cmax * 4           # rough in-kernel f32 working set
    vmem_bytes = 2 * (x_blk + out_blk) + 2 * weight_bytes + act_ws
    vmem_bytes = int(min(max(4 * vmem_bytes, 8 << 20), 96 << 20))

    flops = 0
    for ci, co in chans:
        flops += B * (2 * T * kernel_size * ci       # depthwise (VPU)
                      + 2 * T * ci * co              # pointwise (MXU)
                      + 10 * T * co)                 # relu + layernorm + affine
    flops += B * 2 * T * clast                       # final projection
    bytes_accessed = int(x.size) * 2 + B * weight_bytes + B * T * 4 + B * 4

    out = pl.pallas_call(
        kernel,
        out_shape=jax.ShapeDtypeStruct((B, 1, T), jnp.float32),
        grid_spec=pltpu.PrefetchScalarGridSpec(
            num_scalar_prefetch=1,
            grid=(B,),
            in_specs=in_specs,
            out_specs=pl.BlockSpec((1, 1, T), lambda b, L: (b, 0, 0)),
        ),
        compiler_params=pltpu.CompilerParams(
            dimension_semantics=("parallel",),
            vmem_limit_bytes=vmem_bytes),
        cost_estimate=pl.CostEstimate(
            flops=int(flops),
            transcendentals=int(B * T * num_layers),
            bytes_accessed=int(bytes_accessed)),
    )(lens, x, *flat, proj_w, proj_b)
    return out[:, 0, :]                                       # (B, Tmax)


# ----------------------------- params + reference ----------------------------

def init_params(key, dim, kernel_size, intermediate_dim, num_layers):
    params = {"blocks": []}
    for idx in range(num_layers):
        cin = dim if idx == 0 else intermediate_dim
        key, k1, k2 = jax.random.split(key, 3)
        dw = jax.random.normal(k1, (kernel_size, cin), jnp.float32) \
            * (4.0 / (kernel_size * cin)) ** 0.5
        pw = jax.random.normal(k2, (cin, intermediate_dim), jnp.float32) \
            * (1.0 / cin) ** 0.5
        pb = jnp.zeros((1, intermediate_dim), jnp.float32)
        gamma = jnp.ones((1, intermediate_dim), jnp.float32)
        beta = jnp.zeros((1, intermediate_dim), jnp.float32)
        params["blocks"].append((dw, pw, pb, gamma, beta))
    key, k3, k4 = jax.random.split(key, 3)
    params["proj_w"] = jax.random.normal(k3, (intermediate_dim, 1), jnp.float32) \
        * (1.0 / intermediate_dim) ** 0.5
    params["proj_b"] = jax.random.normal(k4, (1, 1), jnp.float32) * 0.01
    return params


def reference_forward(params, x, mask, kernel_size):
    """Pure-jnp f32 reference of the module math, for a correctness check."""
    mask_tc = jnp.transpose(mask, (0, 2, 1)).astype(jnp.float32)
    pad = kernel_size // 2
    h = x.astype(jnp.float32)
    for (dw, pw, pb, g, b) in params["blocks"]:
        T = h.shape[1]
        hp = jnp.pad(h, ((0, 0), (pad, pad), (0, 0)))
        acc = sum(hp[:, j:j + T, :] * dw[j][None, None, :]
                  for j in range(kernel_size))
        y = acc @ pw + pb[0]
        y = jnp.maximum(y, 0.0)
        mean = y.mean(-1, keepdims=True)
        var = ((y - mean) ** 2).mean(-1, keepdims=True)
        y = (y - mean) / jnp.sqrt(var + 1e-12)
        y = y * g[0] + b[0]
        h = y * mask_tc
    out = h @ params["proj_w"] + params["proj_b"][0, 0]
    return out[..., 0]


# ----------------------------- main ------------------------------------------

if __name__ == "__main__":
    B, T = 2, 16
    dim = 32               # input hidden size H
    intermediate_dim = 32
    kernel_size = 3
    num_layers = 2

    key = jax.random.PRNGKey(0)
    kx, kp = jax.random.split(key)
    x = jax.random.normal(kx, (B, T, dim), jnp.float32).astype(jnp.bfloat16)
    lengths = jnp.array([16, 12], dtype=jnp.int32)               # (B,)
    mask = (jnp.arange(T)[None, :] < lengths[:, None])           # (B, T)
    mask = mask.astype(jnp.float32)[:, None, :]                  # (B, 1, Tmax)

    params = init_params(kp, dim, kernel_size, intermediate_dim, num_layers)

    log_dur = duration_predictor_forward(params, x, lengths, mask, kernel_size)
    log_dur = jax.block_until_ready(log_dur)                     # (B, Tmax)

    ref = reference_forward(params, x, mask, kernel_size)
    assert log_dur.shape == (B, T)
    # tolerance reflects bf16 MXU operands (x, pointwise weights) vs f32 reference
    assert np.allclose(np.asarray(log_dur), np.asarray(ref), atol=5e-2, rtol=5e-2)

    print("KERNEL_OK")
</pallas_src>

<mosaic_0001>
module attributes {stable_mosaic.version = 11 : i64} {
  func.func @kernel(%arg0: i32, %arg1: memref<2xi32, #tpu.memory_space<smem>>, %arg2: memref<1x16x32xbf16, #tpu.memory_space<vmem>>, %arg3: memref<3x32xf32, #tpu.memory_space<vmem>>, %arg4: memref<32x32xbf16, #tpu.memory_space<vmem>>, %arg5: memref<1x32xf32, #tpu.memory_space<vmem>>, %arg6: memref<1x32xf32, #tpu.memory_space<vmem>>, %arg7: memref<1x32xf32, #tpu.memory_space<vmem>>, %arg8: memref<3x32xf32, #tpu.memory_space<vmem>>, %arg9: memref<32x32xbf16, #tpu.memory_space<vmem>>, %arg10: memref<1x32xf32, #tpu.memory_space<vmem>>, %arg11: memref<1x32xf32, #tpu.memory_space<vmem>>, %arg12: memref<1x32xf32, #tpu.memory_space<vmem>>, %arg13: memref<1x32xf32, #tpu.memory_space<vmem>>, %arg14: memref<1x1xf32, #tpu.memory_space<vmem>>, %arg15: memref<1x1x16xf32, #tpu.memory_space<vmem>>) attributes {dimension_semantics = [#tpu.dimension_semantics<parallel>], iteration_bounds = array<i64: 2>, scalar_prefetch = 1 : i64, scratch_operands = 0 : i64, tpu.core_type = #tpu.core_type<tc>, window_params = [{transform_indices = @transform_0, window_bounds = array<i64: 1, 16, 32>}, {pipeline_mode = #tpu.pipeline_mode<synchronous>, transform_indices = @transform_1, window_bounds = array<i64: 3, 32>}, {pipeline_mode = #tpu.pipeline_mode<synchronous>, transform_indices = @transform_2, window_bounds = array<i64: 32, 32>}, {pipeline_mode = #tpu.pipeline_mode<synchronous>, transform_indices = @transform_3, window_bounds = array<i64: 1, 32>}, {pipeline_mode = #tpu.pipeline_mode<synchronous>, transform_indices = @transform_4, window_bounds = array<i64: 1, 32>}, {pipeline_mode = #tpu.pipeline_mode<synchronous>, transform_indices = @transform_5, window_bounds = array<i64: 1, 32>}, {pipeline_mode = #tpu.pipeline_mode<synchronous>, transform_indices = @transform_6, window_bounds = array<i64: 3, 32>}, {pipeline_mode = #tpu.pipeline_mode<synchronous>, transform_indices = @transform_7, window_bounds = array<i64: 32, 32>}, {pipeline_mode = #tpu.pipeline_mode<synchronous>, transform_indices = @transform_8, window_bounds = array<i64: 1, 32>}, {pipeline_mode = #tpu.pipeline_mode<synchronous>, transform_indices = @transform_9, window_bounds = array<i64: 1, 32>}, {pipeline_mode = #tpu.pipeline_mode<synchronous>, transform_indices = @transform_10, window_bounds = array<i64: 1, 32>}, {pipeline_mode = #tpu.pipeline_mode<synchronous>, transform_indices = @transform_11, window_bounds = array<i64: 1, 32>}, {pipeline_mode = #tpu.pipeline_mode<synchronous>, transform_indices = @transform_12, window_bounds = array<i64: 1, 1>}, {transform_indices = @transform_13, window_bounds = array<i64: 1, 1, 16>}]} {
    %0 = arith.index_cast %arg0 : i32 to index
    %1 = memref.load %arg1[%0] : memref<2xi32, #tpu.memory_space<smem>>
    %2 = tpu.iota {dimensions = array<i32: 0>} : vector<16x1xi32>
    %3 = vector.broadcast %1 : i32 to vector<16x1xi32>
    %4 = arith.cmpi slt, %2, %3 : vector<16x1xi32>
    %5 = arith.extui %4 : vector<16x1xi1> to vector<16x1xi32>
    %6 = arith.sitofp %5 : vector<16x1xi32> to vector<16x1xf32>
    %c0 = arith.constant 0 : index
    %c0_0 = arith.constant 0 : index
    %c0_1 = arith.constant 0 : index
    %7 = vector.load %arg2[%c0, %c0_0, %c0_1] : memref<1x16x32xbf16, #tpu.memory_space<vmem>>, vector<1x16x32xbf16>
    %8 = vector.shape_cast %7 : vector<1x16x32xbf16> to vector<16x32xbf16>
    %9 = arith.extf %8 : vector<16x32xbf16> to vector<16x32xf32>
    %cst = arith.constant 0.000000e+00 : f32
    %10 = vector.broadcast %cst : f32 to vector<16x32xf32>
    %c1_i32 = arith.constant 1 : i32
    %11 = tpu.dynamic_rotate %9 by %c1_i32 dim 0 : vector<16x32xf32>, i32 -> vector<16x32xf32>
    %c1_i32_2 = arith.constant 1 : i32
    %12 = vector.broadcast %c1_i32_2 : i32 to vector<16x1xi32>
    %13 = arith.cmpi sge, %2, %12 : vector<16x1xi32>
    %cst_3 = arith.constant 0.000000e+00 : f32
    %14 = vector.shape_cast %13 : vector<16x1xi1> to vector<16x1xi1>
    %15 = vector.broadcast %14 : vector<16x1xi1> to vector<16x32xi1>
    %16 = vector.broadcast %cst_3 : f32 to vector<16x32xf32>
    %17 = arith.select %15, %11, %16 : vector<16x32xi1>, vector<16x32xf32>
    %c0_4 = arith.constant 0 : index
    %c0_5 = arith.constant 0 : index
    %18 = vector.load %arg3[%c0_4, %c0_5] : memref<3x32xf32, #tpu.memory_space<vmem>>, vector<1x32xf32>
    %19 = vector.broadcast %18 : vector<1x32xf32> to vector<16x32xf32>
    %20 = arith.mulf %17, %19 : vector<16x32xf32>
    %21 = arith.addf %10, %20 : vector<16x32xf32>
    %c1 = arith.constant 1 : index
    %c0_6 = arith.constant 0 : index
    %22 = vector.load %arg3[%c1, %c0_6] : memref<3x32xf32, #tpu.memory_space<vmem>>, vector<1x32xf32>
    %23 = vector.broadcast %22 : vector<1x32xf32> to vector<16x32xf32>
    %24 = arith.mulf %9, %23 : vector<16x32xf32>
    %25 = arith.addf %21, %24 : vector<16x32xf32>
    %c15_i32 = arith.constant 15 : i32
    %26 = tpu.dynamic_rotate %9 by %c15_i32 dim 0 : vector<16x32xf32>, i32 -> vector<16x32xf32>
    %c15_i32_7 = arith.constant 15 : i32
    %27 = vector.broadcast %c15_i32_7 : i32 to vector<16x1xi32>
    %28 = arith.cmpi slt, %2, %27 : vector<16x1xi32>
    %cst_8 = arith.constant 0.000000e+00 : f32
    %29 = vector.shape_cast %28 : vector<16x1xi1> to vector<16x1xi1>
    %30 = vector.broadcast %29 : vector<16x1xi1> to vector<16x32xi1>
    %31 = vector.broadcast %cst_8 : f32 to vector<16x32xf32>
    %32 = arith.select %30, %26, %31 : vector<16x32xi1>, vector<16x32xf32>
    %c2 = arith.constant 2 : index
    %c0_9 = arith.constant 0 : index
    %33 = vector.load %arg3[%c2, %c0_9] : memref<3x32xf32, #tpu.memory_space<vmem>>, vector<1x32xf32>
    %34 = vector.broadcast %33 : vector<1x32xf32> to vector<16x32xf32>
    %35 = arith.mulf %32, %34 : vector<16x32xf32>
    %36 = arith.addf %25, %35 : vector<16x32xf32>
    %37 = arith.truncf %36 : vector<16x32xf32> to vector<16x32xbf16>
    %c0_10 = arith.constant 0 : index
    %c0_11 = arith.constant 0 : index
    %38 = vector.load %arg4[%c0_10, %c0_11] : memref<32x32xbf16, #tpu.memory_space<vmem>>, vector<32x32xbf16>
    %cst_12 = arith.constant dense<0.000000e+00> : vector<16x32xf32>
    %39 = tpu.matmul %37, %38, %cst_12 {dimension_numbers = #tpu.dot_dimension_numbers<[1], [0], [0], [1], [0, 0, 1, 1], [], []>} : vector<16x32xbf16>, vector<32x32xbf16>, vector<16x32xf32> -> vector<16x32xf32>
    %c0_13 = arith.constant 0 : index
    %c0_14 = arith.constant 0 : index
    %40 = vector.load %arg5[%c0_13, %c0_14] : memref<1x32xf32, #tpu.memory_space<vmem>>, vector<1x32xf32>
    %41 = vector.broadcast %40 : vector<1x32xf32> to vector<16x32xf32>
    %42 = arith.addf %39, %41 : vector<16x32xf32>
    %cst_15 = arith.constant 0.000000e+00 : f32
    %43 = vector.broadcast %cst_15 : f32 to vector<16x32xf32>
    %44 = arith.maximumf %42, %43 : vector<16x32xf32>
    %cst_16 = arith.constant dense<0.000000e+00> : vector<16xf32>
    %45 = vector.multi_reduction <add>, %44, %cst_16 [1] : vector<16x32xf32> to vector<16xf32>
    %46 = vector.shape_cast %45 : vector<16xf32> to vector<16x1xf32>
    %cst_17 = arith.constant 3.125000e-02 : f32
    %47 = vector.broadcast %cst_17 : f32 to vector<16x1xf32>
    %48 = arith.mulf %46, %47 : vector<16x1xf32>
    %49 = arith.mulf %44, %44 : vector<16x32xf32>
    %cst_18 = arith.constant dense<0.000000e+00> : vector<16xf32>
    %50 = vector.multi_reduction <add>, %49, %cst_18 [1] : vector<16x32xf32> to vector<16xf32>
    %51 = vector.shape_cast %50 : vector<16xf32> to vector<16x1xf32>
    %cst_19 = arith.constant 3.125000e-02 : f32
    %52 = vector.broadcast %cst_19 : f32 to vector<16x1xf32>
    %53 = arith.mulf %51, %52 : vector<16x1xf32>
    %54 = arith.mulf %48, %48 : vector<16x1xf32>
    %55 = arith.subf %53, %54 : vector<16x1xf32>
    %cst_20 = arith.constant 0.000000e+00 : f32
    %56 = vector.broadcast %cst_20 : f32 to vector<16x1xf32>
    %57 = arith.maximumf %55, %56 : vector<16x1xf32>
    %58 = vector.broadcast %48 : vector<16x1xf32> to vector<16x32xf32>
    %59 = arith.subf %44, %58 : vector<16x32xf32>
    %cst_21 = arith.constant 9.99999996E-13 : f32
    %60 = vector.broadcast %cst_21 : f32 to vector<16x1xf32>
    %61 = arith.addf %57, %60 : vector<16x1xf32>
    %62 = math.rsqrt %61 : vector<16x1xf32>
    %63 = vector.broadcast %62 : vector<16x1xf32> to vector<16x32xf32>
    %64 = arith.mulf %59, %63 : vector<16x32xf32>
    %c0_22 = arith.constant 0 : index
    %c0_23 = arith.constant 0 : index
    %65 = vector.load %arg6[%c0_22, %c0_23] : memref<1x32xf32, #tpu.memory_space<vmem>>, vector<1x32xf32>
    %66 = vector.broadcast %65 : vector<1x32xf32> to vector<16x32xf32>
    %67 = arith.mulf %64, %66 : vector<16x32xf32>
    %c0_24 = arith.constant 0 : index
    %c0_25 = arith.constant 0 : index
    %68 = vector.load %arg7[%c0_24, %c0_25] : memref<1x32xf32, #tpu.memory_space<vmem>>, vector<1x32xf32>
    %69 = vector.broadcast %68 : vector<1x32xf32> to vector<16x32xf32>
    %70 = arith.addf %67, %69 : vector<16x32xf32>
    %71 = vector.broadcast %6 : vector<16x1xf32> to vector<16x32xf32>
    %72 = arith.mulf %70, %71 : vector<16x32xf32>
    %cst_26 = arith.constant 0.000000e+00 : f32
    %73 = vector.broadcast %cst_26 : f32 to vector<16x32xf32>
    %c1_i32_27 = arith.constant 1 : i32
    %74 = tpu.dynamic_rotate %72 by %c1_i32_27 dim 0 : vector<16x32xf32>, i32 -> vector<16x32xf32>
    %c1_i32_28 = arith.constant 1 : i32
    %75 = vector.broadcast %c1_i32_28 : i32 to vector<16x1xi32>
    %76 = arith.cmpi sge, %2, %75 : vector<16x1xi32>
    %cst_29 = arith.constant 0.000000e+00 : f32
    %77 = vector.shape_cast %76 : vector<16x1xi1> to vector<16x1xi1>
    %78 = vector.broadcast %77 : vector<16x1xi1> to vector<16x32xi1>
    %79 = vector.broadcast %cst_29 : f32 to vector<16x32xf32>
    %80 = arith.select %78, %74, %79 : vector<16x32xi1>, vector<16x32xf32>
    %c0_30 = arith.constant 0 : index
    %c0_31 = arith.constant 0 : index
    %81 = vector.load %arg8[%c0_30, %c0_31] : memref<3x32xf32, #tpu.memory_space<vmem>>, vector<1x32xf32>
    %82 = vector.broadcast %81 : vector<1x32xf32> to vector<16x32xf32>
    %83 = arith.mulf %80, %82 : vector<16x32xf32>
    %84 = arith.addf %73, %83 : vector<16x32xf32>
    %c1_32 = arith.constant 1 : index
    %c0_33 = arith.constant 0 : index
    %85 = vector.load %arg8[%c1_32, %c0_33] : memref<3x32xf32, #tpu.memory_space<vmem>>, vector<1x32xf32>
    %86 = vector.broadcast %85 : vector<1x32xf32> to vector<16x32xf32>
    %87 = arith.mulf %72, %86 : vector<16x32xf32>
    %88 = arith.addf %84, %87 : vector<16x32xf32>
    %c15_i32_34 = arith.constant 15 : i32
    %89 = tpu.dynamic_rotate %72 by %c15_i32_34 dim 0 : vector<16x32xf32>, i32 -> vector<16x32xf32>
    %c15_i32_35 = arith.constant 15 : i32
    %90 = vector.broadcast %c15_i32_35 : i32 to vector<16x1xi32>
    %91 = arith.cmpi slt, %2, %90 : vector<16x1xi32>
    %cst_36 = arith.constant 0.000000e+00 : f32
    %92 = vector.shape_cast %91 : vector<16x1xi1> to vector<16x1xi1>
    %93 = vector.broadcast %92 : vector<16x1xi1> to vector<16x32xi1>
    %94 = vector.broadcast %cst_36 : f32 to vector<16x32xf32>
    %95 = arith.select %93, %89, %94 : vector<16x32xi1>, vector<16x32xf32>
    %c2_37 = arith.constant 2 : index
    %c0_38 = arith.constant 0 : index
    %96 = vector.load %arg8[%c2_37, %c0_38] : memref<3x32xf32, #tpu.memory_space<vmem>>, vector<1x32xf32>
    %97 = vector.broadcast %96 : vector<1x32xf32> to vector<16x32xf32>
    %98 = arith.mulf %95, %97 : vector<16x32xf32>
    %99 = arith.addf %88, %98 : vector<16x32xf32>
    %100 = arith.truncf %99 : vector<16x32xf32> to vector<16x32xbf16>
    %c0_39 = arith.constant 0 : index
    %c0_40 = arith.constant 0 : index
    %101 = vector.load %arg9[%c0_39, %c0_40] : memref<32x32xbf16, #tpu.memory_space<vmem>>, vector<32x32xbf16>
    %cst_41 = arith.constant dense<0.000000e+00> : vector<16x32xf32>
    %102 = tpu.matmul %100, %101, %cst_41 {dimension_numbers = #tpu.dot_dimension_numbers<[1], [0], [0], [1], [0, 0, 1, 1], [], []>} : vector<16x32xbf16>, vector<32x32xbf16>, vector<16x32xf32> -> vector<16x32xf32>
    %c0_42 = arith.constant 0 : index
    %c0_43 = arith.constant 0 : index
    %103 = vector.load %arg10[%c0_42, %c0_43] : memref<1x32xf32, #tpu.memory_space<vmem>>, vector<1x32xf32>
    %104 = vector.broadcast %103 : vector<1x32xf32> to vector<16x32xf32>
    %105 = arith.addf %102, %104 : vector<16x32xf32>
    %cst_44 = arith.constant 0.000000e+00 : f32
    %106 = vector.broadcast %cst_44 : f32 to vector<16x32xf32>
    %107 = arith.maximumf %105, %106 : vector<16x32xf32>
    %cst_45 = arith.constant dense<0.000000e+00> : vector<16xf32>
    %108 = vector.multi_reduction <add>, %107, %cst_45 [1] : vector<16x32xf32> to vector<16xf32>
    %109 = vector.shape_cast %108 : vector<16xf32> to vector<16x1xf32>
    %cst_46 = arith.constant 3.125000e-02 : f32
    %110 = vector.broadcast %cst_46 : f32 to vector<16x1xf32>
    %111 = arith.mulf %109, %110 : vector<16x1xf32>
    %112 = arith.mulf %107, %107 : vector<16x32xf32>
    %cst_47 = arith.constant dense<0.000000e+00> : vector<16xf32>
    %113 = vector.multi_reduction <add>, %112, %cst_47 [1] : vector<16x32xf32> to vector<16xf32>
    %114 = vector.shape_cast %113 : vector<16xf32> to vector<16x1xf32>
    %cst_48 = arith.constant 3.125000e-02 : f32
    %115 = vector.broadcast %cst_48 : f32 to vector<16x1xf32>
    %116 = arith.mulf %114, %115 : vector<16x1xf32>
    %117 = arith.mulf %111, %111 : vector<16x1xf32>
    %118 = arith.subf %116, %117 : vector<16x1xf32>
    %cst_49 = arith.constant 0.000000e+00 : f32
    %119 = vector.broadcast %cst_49 : f32 to vector<16x1xf32>
    %120 = arith.maximumf %118, %119 : vector<16x1xf32>
    %121 = vector.broadcast %111 : vector<16x1xf32> to vector<16x32xf32>
    %122 = arith.subf %107, %121 : vector<16x32xf32>
    %cst_50 = arith.constant 9.99999996E-13 : f32
    %123 = vector.broadcast %cst_50 : f32 to vector<16x1xf32>
    %124 = arith.addf %120, %123 : vector<16x1xf32>
    %125 = math.rsqrt %124 : vector<16x1xf32>
    %126 = vector.broadcast %125 : vector<16x1xf32> to vector<16x32xf32>
    %127 = arith.mulf %122, %126 : vector<16x32xf32>
    %c0_51 = arith.constant 0 : index
    %c0_52 = arith.constant 0 : index
    %128 = vector.load %arg11[%c0_51, %c0_52] : memref<1x32xf32, #tpu.memory_space<vmem>>, vector<1x32xf32>
    %129 = vector.broadcast %128 : vector<1x32xf32> to vector<16x32xf32>
    %130 = arith.mulf %127, %129 : vector<16x32xf32>
    %c0_53 = arith.constant 0 : index
    %c0_54 = arith.constant 0 : index
    %131 = vector.load %arg12[%c0_53, %c0_54] : memref<1x32xf32, #tpu.memory_space<vmem>>, vector<1x32xf32>
    %132 = vector.broadcast %131 : vector<1x32xf32> to vector<16x32xf32>
    %133 = arith.addf %130, %132 : vector<16x32xf32>
    %134 = vector.broadcast %6 : vector<16x1xf32> to vector<16x32xf32>
    %135 = arith.mulf %133, %134 : vector<16x32xf32>
    %c0_55 = arith.constant 0 : index
    %c0_56 = arith.constant 0 : index
    %136 = vector.load %arg13[%c0_55, %c0_56] : memref<1x32xf32, #tpu.memory_space<vmem>>, vector<1x32xf32>
    %137 = vector.broadcast %136 : vector<1x32xf32> to vector<16x32xf32>
    %138 = arith.mulf %135, %137 : vector<16x32xf32>
    %cst_57 = arith.constant dense<0.000000e+00> : vector<16xf32>
    %139 = vector.multi_reduction <add>, %138, %cst_57 [1] : vector<16x32xf32> to vector<16xf32>
    %140 = vector.shape_cast %139 : vector<16xf32> to vector<16x1xf32>
    %c0_58 = arith.constant 0 : index
    %c0_59 = arith.constant 0 : index
    %141 = vector.load %arg14[%c0_58, %c0_59] : memref<1x1xf32, #tpu.memory_space<vmem>>, vector<1x1xf32>
    %142 = vector.extract %141[0, 0] : f32 from vector<1x1xf32>
    %143 = vector.broadcast %142 : f32 to vector<16x1xf32>
    %144 = arith.addf %140, %143 : vector<16x1xf32>
    %145 = tpu.transpose %144, [1, 0] : vector<16x1xf32> -> vector<1x16xf32>
    %c0_60 = arith.constant 0 : index
    %c0_61 = arith.constant 0 : index
    %c0_62 = arith.constant 0 : index
    %146 = vector.load %arg15[%c0_60, %c0_61, %c0_62] : memref<1x1x16xf32, #tpu.memory_space<vmem>>, vector<1x1x16xf32>
    %147 = vector.shape_cast %146 : vector<1x1x16xf32> to vector<1x16xf32>
    %148 = vector.shape_cast %145 : vector<1x16xf32> to vector<1x1x16xf32>
    tpu.vector_store %arg15[%c0_60, %c0_61, %c0_62], %148 {strides = array<i32>} : memref<1x1x16xf32, #tpu.memory_space<vmem>>, vector<1x1x16xf32>,
    return
  }
  func.func @transform_0(%arg0: i32, %arg1: memref<2xi32, #tpu.memory_space<smem>>) -> (i32, i32, i32) {
    %c0_i32 = arith.constant 0 : i32
    %c0_i32_0 = arith.constant 0 : i32
    %c0_i32_1 = arith.constant 0 : i32
    return %arg0, %c0_i32, %c0_i32_0 : i32, i32, i32
  }
  func.func @transform_1(%arg0: i32, %arg1: memref<2xi32, #tpu.memory_space<smem>>) -> (i32, i32) {
    %c0_i32 = arith.constant 0 : i32
    %c0_i32_0 = arith.constant 0 : i32
    %c0_i32_1 = arith.constant 0 : i32
    return %c0_i32, %c0_i32_0 : i32, i32
  }
  func.func @transform_2(%arg0: i32, %arg1: memref<2xi32, #tpu.memory_space<smem>>) -> (i32, i32) {
    %c0_i32 = arith.constant 0 : i32
    %c0_i32_0 = arith.constant 0 : i32
    %c0_i32_1 = arith.constant 0 : i32
    return %c0_i32, %c0_i32_0 : i32, i32
  }
  func.func @transform_3(%arg0: i32, %arg1: memref<2xi32, #tpu.memory_space<smem>>) -> (i32, i32) {
    %c0_i32 = arith.constant 0 : i32
    %c0_i32_0 = arith.constant 0 : i32
    %c0_i32_1 = arith.constant 0 : i32
    return %c0_i32, %c0_i32_0 : i32, i32
  }
  func.func @transform_4(%arg0: i32, %arg1: memref<2xi32, #tpu.memory_space<smem>>) -> (i32, i32) {
    %c0_i32 = arith.constant 0 : i32
    %c0_i32_0 = arith.constant 0 : i32
    %c0_i32_1 = arith.constant 0 : i32
    return %c0_i32, %c0_i32_0 : i32, i32
  }
  func.func @transform_5(%arg0: i32, %arg1: memref<2xi32, #tpu.memory_space<smem>>) -> (i32, i32) {
    %c0_i32 = arith.constant 0 : i32
    %c0_i32_0 = arith.constant 0 : i32
    %c0_i32_1 = arith.constant 0 : i32
    return %c0_i32, %c0_i32_0 : i32, i32
  }
  func.func @transform_6(%arg0: i32, %arg1: memref<2xi32, #tpu.memory_space<smem>>) -> (i32, i32) {
    %c0_i32 = arith.constant 0 : i32
    %c0_i32_0 = arith.constant 0 : i32
    %c0_i32_1 = arith.constant 0 : i32
    return %c0_i32, %c0_i32_0 : i32, i32
  }
  func.func @transform_7(%arg0: i32, %arg1: memref<2xi32, #tpu.memory_space<smem>>) -> (i32, i32) {
    %c0_i32 = arith.constant 0 : i32
    %c0_i32_0 = arith.constant 0 : i32
    %c0_i32_1 = arith.constant 0 : i32
    return %c0_i32, %c0_i32_0 : i32, i32
  }
  func.func @transform_8(%arg0: i32, %arg1: memref<2xi32, #tpu.memory_space<smem>>) -> (i32, i32) {
    %c0_i32 = arith.constant 0 : i32
    %c0_i32_0 = arith.constant 0 : i32
    %c0_i32_1 = arith.constant 0 : i32
    return %c0_i32, %c0_i32_0 : i32, i32
  }
  func.func @transform_9(%arg0: i32, %arg1: memref<2xi32, #tpu.memory_space<smem>>) -> (i32, i32) {
    %c0_i32 = arith.constant 0 : i32
    %c0_i32_0 = arith.constant 0 : i32
    %c0_i32_1 = arith.constant 0 : i32
    return %c0_i32, %c0_i32_0 : i32, i32
  }
  func.func @transform_10(%arg0: i32, %arg1: memref<2xi32, #tpu.memory_space<smem>>) -> (i32, i32) {
    %c0_i32 = arith.constant 0 : i32
    %c0_i32_0 = arith.constant 0 : i32
    %c0_i32_1 = arith.constant 0 : i32
    return %c0_i32, %c0_i32_0 : i32, i32
  }
  func.func @transform_11(%arg0: i32, %arg1: memref<2xi32, #tpu.memory_space<smem>>) -> (i32, i32) {
    %c0_i32 = arith.constant 0 : i32
    %c0_i32_0 = arith.constant 0 : i32
    %c0_i32_1 = arith.constant 0 : i32
    return %c0_i32, %c0_i32_0 : i32, i32
  }
  func.func @transform_12(%arg0: i32, %arg1: memref<2xi32, #tpu.memory_space<smem>>) -> (i32, i32) {
    %c0_i32 = arith.constant 0 : i32
    %c0_i32_0 = arith.constant 0 : i32
    %c0_i32_1 = arith.constant 0 : i32
    return %c0_i32, %c0_i32_0 : i32, i32
  }
  func.func @transform_13(%arg0: i32, %arg1: memref<2xi32, #tpu.memory_space<smem>>) -> (i32, i32, i32) {
    %c0_i32 = arith.constant 0 : i32
    %c0_i32_0 = arith.constant 0 : i32
    %c0_i32_1 = arith.constant 0 : i32
    return %arg0, %c0_i32, %c0_i32_0 : i32, i32, i32
  }
}

</mosaic_0001>

<bundles_post_ra>
// kernel: tpu_custom_call.1
= control target key start
LH: loop header
LB: loop body
LE: loop exit
PB: predicated region body
PF: predicated region fallthrough
CT: control target
= control target key end

     0   :  { %s1554_s29 = smov [#allocation3]   ;;  %s1970_s0 = inlined_call_operand.hbm [shape: s32[2], index: 0, kind: input, shape index: {}]   ;;  %s1971_s1 = inlined_call_operand.hbm [shape: bf16[2,16,32], index: 1, kind: input, shape index: {}]   ;;  %s1972_s2 = inlined_call_operand.hbm [shape: f32[3,32], index: 2, kind: input, shape index: {}]   ;;  %s1973_s3 = inlined_call_operand.hbm [shape: bf16[32,32], index: 3, kind: input, shape index: {}]   ;;  %s1974_s4 = inlined_call_operand.hbm [shape: f32[1,32], index: 4, kind: input, shape index: {}]   ;;  %s1975_s5 = inlined_call_operand.hbm [shape: f32[1,32], index: 5, kind: input, shape index: {}]   ;;  %s1976_s6 = inlined_call_operand.hbm [shape: f32[1,32], index: 6, kind: input, shape index: {}]   ;;  %s1977_s7 = inlined_call_operand.hbm [shape: f32[3,32], index: 7, kind: input, shape index: {}]   ;;  %s1978_s8 = inlined_call_operand.vmem [shape: bf16[32,32], index: 8, kind: input, shape index: {}]   ;;  %s1979_s9 = inlined_call_operand.vmem [shape: f32[1,32], index: 9, kind: input, shape index: {}]   ;;  %s1980_s10 = inlined_call_operand.vmem [shape: f32[1,32], index: 10, kind: input, shape index: {}]   ;;  %s1981_s11 = inlined_call_operand.vmem [shape: f32[1,32], index: 11, kind: input, shape index: {}]   ;;  %s1982_s12 = inlined_call_operand.vmem [shape: f32[1,32], index: 12, kind: input, shape index: {}]   ;;  %s1983_s14 = inlined_call_operand.hbm [shape: f32[2,1,16], index: 14, kind: output, shape index: {}]   ;;  %s1984_s13 = inlined_call_operand.<no memory space> [shape: f32[1,1], index: 13, kind: input, shape index: {}]  }
   0x1   :  { %1991 = sst [smem:[#allocation24_spill]] %s1972_s2  ;;  %v21_v0 = vstv %s1984_s13 }
   0x2   :  { %1992 = sst [smem:[#allocation25_spill]] %s1973_s3  ;;  %22 = vst [vmem:[#allocation4] sm:$0x1] %v21_v0 }
   0x3   :  { %1993 = sst [smem:[#allocation26_spill]] %s1974_s4 }
   0x4   :  { %1994 = sst [smem:[#allocation27_spill]] %s1975_s5 }
   0x5   :  { %1995 = sst [smem:[#allocation28_spill]] %s1976_s6 }
   0x6   :  { %1996 = sst [smem:[#allocation29_spill]] %s1977_s7 }
   0x7   :  { %20 = dma.hbm_to_smem %s1970_s0, 16, %s1554_s29, [#allocation2] }
   0x8   :  { %1516 = dma.done.wait [#allocation2], 16 }
   0x9   :  { %1517 = vsyncadd [#allocation2], 4294967280 }
   0xa   :  { %24 = sfence }
   0xb   :  { %25 = vsyncpa [#allocation6], 0 }
   0xc   :  { %27 = vsyncpa [#allocation6 + $0x1], 0 }
   0xd   :  { %28 = vsyncpa [#allocation9], 0 }
   0xe   :  { %29 = vsyncpa [#allocation12], 0 }
   0xf   :  { %30 = vsyncpa [#allocation15], 0 }
  0x10   :  { %31 = vsyncpa [#allocation7], 0 }
  0x11   :  { %33 = vsyncpa [#allocation7 + $0x1], 0  ;;  %s1648_s18 = smov 0   ;;  %s1650_s19 = smov 0  }
  0x12   :  { %s1652_s0 = smov 0   ;;  %s1654_s20 = smov 0  }
  0x13 LB: > { %s1555_s13 = smov [#allocation8]   ;;  %s1669_s22 = sadd.s32 4294967295, %s1552_s20   ;;  %s1552_s20 = sphi %s1654_s20, %s2028_s20   ;;  %s1548_s0 = sphi %s1652_s0, %s2027_s0   ;;  %s1544_s19 = sphi %s1650_s19, %s2026_s19   ;;  %s1540_s18 = sphi %s1648_s18, %s2025_s18  }
  0x14   : > { %s361_s21 = sshll.u32 %s1555_s13, 4  ;;  %p1086_p0 = scmp.ge.s32.totalorder %s1552_s20, 1  ;;  %s362_s21 = int_to_ptr.vmem [resolvable:$true] %s361_s21 }
  0x15   : > { %p1985_p1 = scmp.eq.s32.totalorder %s1669_s22, 0  ;;  %p348_p2 = scmp.lt.s32.totalorder %s1552_s20, 3 }
  0x16   : > { %s1556_s24 = smov [#allocation11]   ;;  %s1557_s26 = smov [#allocation14]  }
  0x17   : > { %p1674_p3 = pnand %p1086_p0, %p348_p2  ;;  %s385_s25 = sshll.u32 %s1556_s24, 4  ;;  %s386_s25 = int_to_ptr.vmem [resolvable:$true] %s385_s25 }
  0x18   : > { %s407_s27 = sshll.u32 %s1557_s26, 4  ;;  %s1558_s29 = smov [#allocation10]   ;;  %s1687_s27 = int_to_ptr.vmem [resolvable:$true] %s407_s27 }
  0x19   : > { %s1997_s23 = scalar_select %p1674_p3, 1, 0 }
  0x1a   : > { %p1186_p5 = pneg %p1674_p3  ;;  %s1689_s30 = sshll.u32 %s1558_s29, 4  ;;  %s372_s30 = int_to_ptr.vmem [resolvable:$true] %s1689_s30 }
  0x1b   : > { %s1301_s16 = scalar_lea.vmem %s362_s21, 64  ;;  %p1309_p11 = scmp.lt.s32.totalorder %s362_s21, %s362_s21 }
  0x1c   : > { %p1683_p6 = pnand %p1186_p5, %p1985_p1  ;;  %p1302_p8 = scmp.ne.s32.totalorder %s362_s21, %s1301_s16 }
  0x1d   : > { %p1310_p12 = scmp.lt.s32.totalorder %s1301_s16, %s1301_s16 }
  0x1e   : > { %p1693_p7 = pneg %p1683_p6 }
  0x1f   : > { %p1311_p13 = por %p1310_p12, %p1309_p11 }
  0x20   : > { %p1304_p9 = pnand %p1302_p8, %p1693_p7 }
  0x22   : > { %p1305_p10 = pneg %p1304_p9 }
  0x24   : > { %p1312_p0 = pnand %p1311_p13, %p1305_p10 }
  0x26   : > { %1315 = shalt.err (!%p1312_p0)
}
  0x27   : > { %s2000_s2 = sld [smem:[#allocation24_spill]]  ;;  %s1327_s24 = scalar_lea.vmem %s386_s25, 16 }
  0x28   : > { %p1328_p2 = scmp.ne.s32.totalorder %s386_s25, %s1327_s24  ;;  %s1334_s26 = scalar_lea.vmem %s386_s25, 32 }
  0x29   : > { %p1335_p8 = scmp.lt.s32.totalorder %s386_s25, %s386_s25  ;;  %p1336_p9 = scmp.lt.s32.totalorder %s1334_s26, %s1327_s24 }
  0x2a   : > { %p1330_p5 = pnand %p1328_p2, %p1693_p7 }
  0x2b   : > { %p1337_p1 = por %p1336_p9, %p1335_p8 }
  0x2c   : > { %p1331_p4 = pneg %p1330_p5 }
  0x2d   : > { %1189 = dma.hbm_to_vmem [thread:$0]  (!%p1683_p6), %s2000_s2, 64, %s362_s21, [#allocation9]  }
  0x2e   : > { %p1338_p3 = pnand %p1337_p1, %p1331_p4 }
  0x30   : > { %1341 = shalt.err (!%p1338_p3)
}
  0x31   : > { %s2001_s4 = sld [smem:[#allocation26_spill]]  ;;  %s1353_s21 = scalar_lea.vmem %s1687_s27, 16 }
  0x32   : > { %p1354_p10 = scmp.ne.s32.totalorder %s1687_s27, %s1353_s21  ;;  %s1360_s17 = scalar_lea.vmem %s1687_s27, 32 }
  0x33   : > { %p1361_p1 = scmp.lt.s32.totalorder %s1687_s27, %s1687_s27  ;;  %p1362_p3 = scmp.lt.s32.totalorder %s1360_s17, %s1353_s21 }
  0x34   : > { %p1356_p11 = pnand %p1354_p10, %p1693_p7 }
  0x35   : > { %p1363_p4 = por %p1362_p3, %p1361_p1 }
  0x36   : > { %p1357_p12 = pneg %p1356_p11 }
  0x37   : > { %1195 = dma.hbm_to_vmem [thread:$0]  (!%p1683_p6), %s2001_s4, 16, %s386_s25, [#allocation12]  }
  0x38   : > { %p1364_p13 = pnand %p1363_p4, %p1357_p12 }
  0x3a   : > { %1367 = shalt.err (!%p1364_p13)
}
  0x3b   : > { %s2002_s6 = sld [smem:[#allocation28_spill]]  ;;  %s1379_s25 = scalar_lea.vmem %s372_s30, 256 }
  0x3c   : > { %p1380_p0 = scmp.ne.s32.totalorder %s372_s30, %s1379_s25  ;;  %p1387_p8 = scmp.lt.s32.totalorder %s372_s30, %s372_s30 }
  0x3d   : > { %p1388_p9 = scmp.lt.s32.totalorder %s1379_s25, %s1379_s25 }
  0x3e   : > { %p1382_p2 = pnand %p1380_p0, %p1693_p7 }
  0x3f   : > { %p1389_p10 = por %p1388_p9, %p1387_p8 }
  0x40   : > { %p1383_p5 = pneg %p1382_p2 }
  0x41   : > { %1201 = dma.hbm_to_vmem [thread:$0]  (!%p1683_p6), %s2002_s6, 16, %s1687_s27, [#allocation15]  }
  0x42   : > { %p1390_p11 = pnand %p1389_p10, %p1383_p5 }
  0x44   : > { %1393 = shalt.err (!%p1390_p11)
}
  0x45   : > { %s1987_s26 = smov 64   ;;  %s1988_s29 = smov 4  }
  0x46   : > { %s2003_s3 = sld [smem:[#allocation25_spill]]  ;;  %s1561_s21 = smov [#allocation13]  }
  0x47   : > { %s396_s17 = sshll.u32 %s1561_s21, 4  ;;  %s1562_s13 = smov [#allocation16]   ;;  %s397_s17 = int_to_ptr.vmem [resolvable:$true] %s396_s17 }
  0x48   : > { %s418_s24 = sshll.u32 %s1562_s13, 4  ;;  %s1405_s25 = scalar_lea.vmem %s397_s17, 16  ;;  %s419_s24 = int_to_ptr.vmem [resolvable:$true] %s418_s24 }
  0x49   : > { %p1406_p12 = scmp.ne.s32.totalorder %s397_s17, %s1405_s25  ;;  %s1412_s2 = scalar_lea.vmem %s397_s17, 32 }
  0x4a   : > { %p1413_p4 = scmp.lt.s32.totalorder %s397_s17, %s397_s17  ;;  %p1414_p13 = scmp.lt.s32.totalorder %s1412_s2, %s1405_s25 }
  0x4b   : > { %p1408_p1 = pnand %p1406_p12, %p1693_p7 }
  0x4c   : > { %1192 = dma.hbm_to_vmem [thread:$0]  (!%p1683_p6), %s2003_s3, 256, %s372_s30, [#allocation9], %s1987_s26, %s1987_s26, %s1988_s29  }
  0x4d   : > { %p1409_p3 = pneg %p1408_p1  ;;  %p1415_p0 = por %p1414_p13, %p1413_p4 }
  0x4f   : > { %p1416_p2 = pnand %p1415_p0, %p1409_p3 }
  0x51   : > { %1419 = shalt.err (!%p1416_p2)
}
  0x52   : > { %s2004_s5 = sld [smem:[#allocation27_spill]]  ;;  %s1431_s16 = scalar_lea.vmem %s419_s24, 64 }
  0x53   : > { %p1432_p5 = scmp.ne.s32.totalorder %s419_s24, %s1431_s16  ;;  %p1439_p10 = scmp.lt.s32.totalorder %s419_s24, %s419_s24 }
  0x54   : > { %p1440_p11 = scmp.lt.s32.totalorder %s1431_s16, %s1431_s16 }
  0x55   : > { %p1434_p8 = pnand %p1432_p5, %p1693_p7 }
  0x56   : > { %p1441_p12 = por %p1440_p11, %p1439_p10 }
  0x57   : > { %p1435_p9 = pneg %p1434_p8 }
  0x58   : > { %1198 = dma.hbm_to_vmem [thread:$0]  (!%p1683_p6), %s2004_s5, 16, %s397_s17, [#allocation12]  }
  0x59   : > { %p1442_p1 = pnand %p1441_p12, %p1435_p9 }
  0x5b   : > { %1445 = shalt.err (!%p1442_p1)
}
  0x5c   : > { %s2005_s7 = sld [smem:[#allocation29_spill]]  ;;  %s1085_s15 = sadd.s32 4294967294, %s1552_s20  }
  0x5d   : > { %s1751_s28 = sadd.s32 1, %s1552_s20   ;;  %s46_s13 = sadd.s32 1, %s1548_s0 }
  0x5e   : > { %s43_s17 = ssub.s32 %s1552_s20, %s1751_s28  ;;  %p53_p3 = scmp.ne.s32.totalorder %s1548_s0, %s1544_s19 }
  0x5f   : > { %p44_p7 = scmp.eq.s32.totalorder %s43_s17, 0  ;;  %p54_p4 = scmp.eq.s32.totalorder %s1552_s20, 0 }
  0x60   : > { %p59_p13 = scmp.ne.s32.totalorder %s1544_s19, %s1540_s18  ;;  %p2007_p2 = scmp.eq.s32.totalorder %s1669_s22, 0 }
  0x61   : > { %s1762_s25 = scalar_select %p44_p7, %s1548_s0, %s46_s13  }
  0x62   : > { %1204 = dma.hbm_to_vmem [thread:$0]  (!%p1683_p6), %s2005_s7, 64, %s419_s24, [#allocation15]  }
  0x63   : > { %p1764_p0 = por %p54_p4, %p53_p3  ;;  %p1770_p6 = por %p2007_p2, %p59_p13 }
  0x64   : > { %p335_p5 = scmp.eq.s32.totalorder %s1669_s22, 1  ;;  %p341_p8 = scmp.eq.s32.totalorder %s1085_s15, 1 }
  0x65   : > { %s2008_s24 = scalar_select %p1770_p6, 1, 0 }
  0x66   : > { %p1219_p9 = scmp.lt.s32.totalorder %s1552_s20, 2  ;;  %s447_s27 = sand.u32 1, %s1548_s0  }
  0x67   : > { %p1777_p10 = por %p335_p5, %p53_p3  ;;  %p1781_p11 = por %p341_p8, %p59_p13 }
  0x68   : > { %s1094_s21 = sshll.u32 %s447_s27, 3  ;;  %s1129_s17 = sshll.u32 %s1552_s20, 7 }
  0x69   : > { %s2009_s16 = scalar_select %p1777_p10, 1, 0 }
  0x6a   : > { %s2010_s2 = scalar_select %p1781_p11, 1, 0 }
  0x6b   : > { %s1789_s29 = scalar_lea.hbm %s1971_s1, %s1129_s17  ;;  %s451_s15 = scalar_lea.vmem [#allocation5], %s1094_s21 }
  0x6c   : > { %s458_s3 = sshll.u32 %s451_s15, 4  ;;  %p1795_p12 = pnand %p1219_p9, %p1764_p0  ;;  %s1791_s3 = int_to_ptr.vmem [resolvable:$true] %s458_s3 }
  0x6d   : > { %s1799_s5 = scalar_lea.sflag [#allocation6], %s447_s27  ;;  %s1446_s6 = scalar_lea.hbm %s1789_s29, 128 }
  0x6e   : > { %p1447_p1 = scmp.ne.s32.totalorder %s1789_s29, %s1446_s6  ;;  %p1448_p7 = pneg %p1795_p12 }
  0x6f   : > { %s1451_s21 = scalar_lea.hbm %s1971_s1, 256  ;;  %p1452_p13 = scmp.lt.s32.totalorder %s1789_s29, %s1971_s1 }
  0x70   : > { %p1449_p3 = pnand %p1448_p7, %p1447_p1  ;;  %p1453_p0 = scmp.lt.s32.totalorder %s1451_s21, %s1446_s6 }
  0x72   : > { %p1450_p4 = pneg %p1449_p3  ;;  %p1454_p2 = por %p1453_p0, %p1452_p13 }
  0x74   : > { %p1455_p5 = pnand %p1454_p2, %p1450_p4 }
  0x76   : > { %1458 = shalt.err (!%p1455_p5)
}
  0x77   : > { %s1459_s30 = scalar_lea.vmem %s1791_s3, 128  ;;  %s1563_s27 = smov [#allocation5]  }
  0x78   : > { %p1460_p8 = scmp.ne.s32.totalorder %s1791_s3, %s1459_s30  ;;  %s1464_s7 = sshll.u32 %s1563_s27, 4  ;;  %s1465_s7 = int_to_ptr.vmem [resolvable:$false] %s1464_s7 }
  0x79   : > { %s1466_s26 = scalar_lea.vmem %s1465_s7, 256  ;;  %p1467_p3 = scmp.lt.s32.totalorder %s1791_s3, %s1465_s7 }
  0x7a   : > { %p1462_p9 = pnand %p1460_p8, %p1448_p7  ;;  %p1468_p11 = scmp.lt.s32.totalorder %s1466_s26, %s1459_s30 }
  0x7c   : > { %p1463_p1 = pneg %p1462_p9  ;;  %p1469_p10 = por %p1468_p11, %p1467_p3 }
  0x7e   : > { %p1470_p6 = pnand %p1469_p10, %p1463_p1 }
  0x80   : > { %1473 = shalt.err (!%p1470_p6)
}
  0x81   : > { %s2012_s6 = smov 4   ;;  %s2013_s17 = smov 64  }
  0x82   : > { %1208 = dma.hbm_to_vmem [thread:$0]  (!%p1795_p12), %s1789_s29, 128, %s1791_s3, %s1799_s5, %s2013_s17, %s2013_s17, %s2012_s6  }
  0x83   : > { %p2014_p7 = scmp.ne.s32.totalorder %s1997_s23, 0 }
  0x84   : > { %s1826_s21 = sand.u32 (!%p2014_p7), 1, %s1544_s19   ;;  %p2015_p6 = scmp.ne.s32.totalorder (!%p2014_p7), %s2008_s24, 0 }
  0x85   : > { %470 = sbr.rel (%p2014_p7) target bundleno = 1200 (0x4b0), region = 72  ;;  %s1098_s7 = sshll.u32 (!%p2014_p7), %s1826_s21, 3 }
  0x86   : > { %s473_s13 = scalar_lea.sflag (!%p2014_p7), [#allocation6], %s1826_s21  ;;  %s476_s15 = scalar_lea.vmem (!%p2014_p7), [#allocation5], %s1098_s7 }
  0x8a   : > { %1519 = dma.done.wait (%p2015_p6), %s473_s13, 128  }
  0x8b   : > { %1521 = vsyncadd (%p2015_p6), %s473_s13, 4294967168  ;;  %p2016_p10 = scmp.eq.s32.totalorder %s1669_s22, 0 }
  0x8d   : > { %1523 = dma.done.wait (%p2016_p10), [#allocation9], 320   ;;  %p2017_p11 = pmov %p2016_p10 }
  0x8e   : > { %p2018_p12 = pmov %p2016_p10 }
  0x8f   : > { %1525 = vsyncadd (%p2017_p11), [#allocation9], 4294966976 }
  0x90   : > { %1527 = dma.done.wait (%p2018_p12), [#allocation12], 32   ;;  %p2019_p4 = pmov %p2016_p10 }
  0x92   : > { %1529 = vsyncadd (%p2019_p4), [#allocation12], 4294967264  ;;  %p2020_p13 = pmov %p2019_p4 }
  0x93   : > { %p2021_p0 = pmov %p2019_p4 }
  0x94   : > { %1531 = dma.done.wait (%p2020_p13), [#allocation15], 80  }
  0x95   : > { %1533 = vsyncadd (%p2021_p0), [#allocation15], 4294967216  ;;  %v1564_v1 = vmov 0.0   ;;  %vm1565_vm0 = vmmov 0   ;;  %v544_v2 = vlaneseq  ;;  %v1270_v4 = vld [vmem:[#allocation10 + $0x8] sm:$0xff]   ;;  %v1271_v5 = vld [vmem:[#allocation10] sm:$0xff]  }
  0x96   : > { %1140 = vmatprep.subr.bf16.mxu0 %v1564_v1  ;;  %1144 = vmatprep.mubr.msk.bf16.mxu0 %vm1565_vm0, %v1564_v1  ;;  %v1131_v7 = vld [vmem:[%s476_s15] sm:$0xff]   ;;  %v1108_v10 = vld [vmem:[#allocation8 + $0x1] ss:$0 sm:$0xff]  ;;  %v1107_v13 = vld [vmem:[#allocation8] ss:$0 sm:$0xff]  ;;  %vm635_vm5 = vcmask 261120  }
  0x97   : > { %1148 = vmatprep.subr.bf16.mxu1 %v1564_v1  ;;  %1152 = vmatprep.mubr.msk.bf16.mxu1 %vm1565_vm0, %v1564_v1  ;;  %v1850_v3 = vshrl.u32 %v544_v2, 7  ;;  %v1132_v8 = vunpack.c.l.bf16 %v1131_v7  ;;  %v1133_v9 = vunpack.c.h.bf16 %v1131_v7  ;;  %v1109_v17 = vld [vmem:[#allocation8 + $0x2] ss:$0 sm:$0xff]  ;;  %v1110_v34 = vld [vmem:[#allocation11] ss:$0 sm:$0xff]  ;;  %v1272_v49 = vld [vmem:[%s1978_s8 + $0x8] sm:$0xff]  }
  0x98   : > { %1141 = vmatpush3.bf16.msra.mxu0 %v1270_v4  ;;  %1149 = vmatpush3.bf16.msra.mxu1 %v1272_v49  ;;  %v1273_v50 = vld [vmem:[%s1978_s8] sm:$0xff]   ;;  %s543_s29 = sld [smem:[#allocation3 + %s1669_s22]]  ;;  %s1126_s3 = sshll.u32 %s1669_s22, 4  ;;  %vm947_vm8 = vcmask 122880  }
  0x99   : > { %v1853_v6 = vadd.s32 8, %v1850_v3  ;;  %1142 = vmatprep.subr.bf16.mxu0 %v1564_v1  ;;  %vm560_vm1 = vcmp.lt.s32.totalorder %v1850_v3, 1  ;;  %v558_v11 = vrot.slane %v1132_v8, 7  ;;  %v559_v12 = vrot.slane %v1133_v9, 7  ;;  %1150 = vmatprep.subr.bf16.mxu1 %v1564_v1  ;;  %s541_s4 = scalar_lea.vmem [#allocation17], %s1826_s21  ;;  %s1933_s24 = scalar_lea.hbm %s1983_s14, %s1126_s3 }
  0x9a   : > { %vm563_vm2 = vcmp.ge.s32.totalorder %v1850_v3, 1  ;;  %vm591_vm3 = vcmp.lt.s32.totalorder %v1850_v3, 7  ;;  %v586_v14 = vmul.f32 %v1133_v9, %v1108_v10  ;;  %v589_v15 = vrot.slane %v1132_v8, 1  ;;  %s962_s5 = sshll.u32 %s541_s4, 4  ;;  %s950_s30 = scalar_lea.sflag [#allocation7], %s1826_s21  ;;  %s963_s5 = int_to_ptr.vmem [resolvable:$true] %s962_s5 }
  0x9b   : > { %v590_v16 = vrot.slane %v1133_v9, 1  ;;  %vm595_vm4 = vcmp.lt.s32.totalorder %v1853_v6, 15  ;;  %v561_v18 = vsel %vm560_vm1, %v558_v11, %v559_v12  ;;  %v562_v19 = vsel %vm560_vm1, %v559_v12, %v558_v11  ;;  %v1114_v9 = vld [vmem:[#allocation13] ss:$0 sm:$0xff]  ;;  %v1115_v11 = vld [vmem:[#allocation14] ss:$0 sm:$0xff] }
  0x9c   : > { %1143 = vmatpush3.bf16.msra.mxu0 %v1271_v5  ;;  %v585_v20 = vmul.f32 %v1132_v8, %v1108_v10  ;;  %v569_v21 = vsel %vm563_vm2, %v562_v19, 0.0  ;;  %v577_v22 = vmul.f32 %v1107_v13, %v561_v18  ;;  %1151 = vmatpush3.bf16.msra.mxu1 %v1273_v50  ;;  %s1474_s27 = scalar_lea.vmem %s963_s5, 16  ;;  %p2022_p5 = scmp.ne.s32.totalorder %s2009_s16, 0 }
  0x9d   : > { %v592_v23 = vsel %vm591_vm3, %v589_v15, %v590_v16  ;;  %v593_v24 = vsel %vm591_vm3, %v590_v16, %v589_v15  ;;  %v576_v25 = vmul.f32 %v1107_v13, %v569_v21  ;;  %p1475_p2 = scmp.ne.s32.totalorder %s963_s5, %s1474_s27  ;;  %s1566_s26 = smov [#allocation17]  }
  0x9e   : > { %v601_v26 = vsel %vm595_vm4, %v593_v24, 0.0  ;;  %v607_v27 = vmul.f32 %v1109_v17, %v592_v23  ;;  %v588_v28 = vadd.f32 %v586_v14, %v577_v22  ;;  %v547_v8 = vstv %s543_s29  ;;  %s1478_s6 = sshll.u32 %s1566_s26, 4  ;;  %s1479_s6 = int_to_ptr.vmem [resolvable:$false] %s1478_s6 }
  0x9f   : > { %v608_v29 = vmul.f32 %v1109_v17, %v601_v26  ;;  %v587_v30 = vadd.f32 %v585_v20, %v576_v25  ;;  %vm548_vm6 = vcmp.lt.s32.totalorder %v1850_v3, %v547_v8  ;;  %vm549_vm7 = vcmp.lt.s32.totalorder %v1853_v6, %v547_v8  ;;  %v1116_v25 = vld [vmem:[#allocation16] ss:$0 sm:$0xff]  ;;  %p1476_p8 = pnand %p1475_p2, %p2022_p5  ;;  %s1480_s22 = scalar_lea.vmem %s1479_s6, 32 }
  0xa0   : > { %v1888_v17 = vsel %vm548_vm6, 1.0, %v1564_v1  ;;  %v1891_v19 = vsel %vm549_vm7, 1.0, %v1564_v1  ;;  %p1481_p1 = scmp.lt.s32.totalorder %s963_s5, %s1479_s6  ;;  %p1482_p3 = scmp.lt.s32.totalorder %s1480_s22, %s1474_s27 }
  0xa1   : > { %v610_v31 = vadd.f32 %v608_v29, %v588_v28  ;;  %v609_v32 = vadd.f32 %v607_v27, %v587_v30  ;;  %v1117_v28 = vld [vmem:[#allocation16 + $0x1] ss:$0 sm:$0xff]  ;;  %v1118_v29 = vld [vmem:[#allocation16 + $0x2] ss:$0 sm:$0xff]  ;;  %p1477_p9 = pneg %p1476_p8 }
  0xa2   : > { %p1483_p7 = por %p1482_p3, %p1481_p1 }
  0xa3   : > { %v611_v33 = vpack.c.bf16 %v610_v31, %v609_v32 }
  0xa4   : > { %p1484_p6 = pnand %p1483_p7, %p1477_p9 }
  0xa5   : > { %1145 = vmatmul.mubr.msk.bf16.vlgmr.msra.gmra.mxu0 %vm635_vm5, %v611_v33 }
 0x165   : > { %v673_v35 = vpop.f32.mrf.mxu0 }
 0x166   : > { %v674_v36 = vadd.f32 %v1110_v34, %v673_v35 }
 0x167   : > { %v1146_v37 = vpop.f32.mrf.mxu0 }
 0x168   : > { %v680_v38 = vmax.f32 %v674_v36, 0.0 }
 0x169   : > { %v676_v39 = vpop.f32.mrf.mxu0 }
 0x16a   : > { %v677_v40 = vadd.f32 %v1110_v34, %v676_v39  ;;  %v682_v41 = vsel %vm635_vm5, %v680_v38, 0.0  ;;  %v690_v42 = vmul.f32 %v680_v38, %v680_v38 }
 0x16b   : > { %683 = vadd.xlane.f32.xlu0 %v682_v41  ;;  %v1147_v43 = vpop.f32.mrf.mxu0 }
 0x16c   : > { %v681_v44 = vmax.f32 %v677_v40, 0.0  ;;  %v692_v45 = vsel %vm635_vm5, %v690_v42, 0.0 }
 0x16d   : > { %693 = vadd.xlane.f32.xlu1 %v692_v45 }
 0x16e   : > { %v685_v46 = vsel %vm635_vm5, %v681_v44, 0.0  ;;  %v691_v47 = vmul.f32 %v681_v44, %v681_v44 }
 0x16f   : > { %686 = vadd.xlane.f32.xlu0 %v685_v46  ;;  %v1119_v46 = vld [vmem:[%s1979_s9] ss:$0 sm:$0xff] }
 0x170   : > { %v695_v48 = vsel %vm635_vm5, %v691_v47, 0.0 }
 0x171   : > { %696 = vadd.xlane.f32.xlu1 %v695_v48 }
 0x1f4   : > { %v684_v51 = vpop.xlane.xlu0 %683 }
 0x1f5   : > { %v688_v52 = vmul.f32 0.03125, %v684_v51 }
 0x1f6   : > { %v694_v53 = vpop.xlane.xlu1 %693 }
 0x1f7   : > { %v700_v54 = vmul.f32 %v688_v52, %v688_v52  ;;  %v698_v55 = vmul.f32 0.03125, %v694_v53  ;;  %v706_v5 = vsub.f32 %v680_v38, %v688_v52 }
 0x1f8   : > { %v687_v56 = vpop.xlane.xlu0 %686 }
 0x1f9   : > { %v702_v57 = vsub.f32 %v698_v55, %v700_v54  ;;  %v689_v58 = vmul.f32 0.03125, %v687_v56 }
 0x1fa   : > { %v697_v59 = vpop.xlane.xlu1 %696 }
 0x1fb   : > { %v704_v60 = vmax.f32 %v702_v57, 0.0  ;;  %v701_v61 = vmul.f32 %v689_v58, %v689_v58  ;;  %v699_v62 = vmul.f32 0.03125, %v697_v59  ;;  %v707_v13 = vsub.f32 %v681_v44, %v689_v58  ;;  %v910_v59 = vld [vmem:[#allocation4] sm:$0x1] }
 0x1fc   : > { %1156 = vpush %v910_v59 }
 0x1fd   : > { %v708_v63 = vadd.f32 1e-12, %v704_v60  ;;  %v703_v0 = vsub.f32 %v699_v62, %v701_v61 }
 0x1ff   : > { %1274 = vrsqrt.f32 %v708_v63  ;;  %v705_v2 = vmax.f32 %v703_v0, 0.0 }
 0x201   : > { %v709_v4 = vadd.f32 1e-12, %v705_v2 }
 0x203   : > { %1276 = vrsqrt.f32 %v709_v4 }
 0x20c   : > { %v1275_v7 = vpop.eup %1274 }
 0x20d   : > { %v712_v10 = vmul.f32 %v1275_v7, %v706_v5 }
 0x20f   : > { %v721_v12 = vmul.f32 %v1114_v9, %v712_v10 }
 0x210   : > { %v1277_v14 = vpop.eup %1276 }
 0x211   : > { %v713_v15 = vmul.f32 %v1277_v14, %v707_v13  ;;  %v730_v16 = vadd.f32 %v1115_v11, %v721_v12 }
 0x213   : > { %v722_v18 = vmul.f32 %v1114_v9, %v713_v15  ;;  %v732_v21 = vmul.f32 %v1888_v17, %v730_v16 }
 0x215   : > { %v731_v20 = vadd.f32 %v1115_v11, %v722_v18  ;;  %v734_v23 = vrot.slane %v732_v21, 7  ;;  %v758_v26 = vrot.slane %v732_v21, 1  ;;  %v754_v38 = vmul.f32 %v1117_v28, %v732_v21  ;;  %v1123_v18 = vld [vmem:[%s1980_s10] ss:$0 sm:$0xff] }
 0x216   : > { %v1124_v21 = vld [vmem:[%s1981_s11] ss:$0 sm:$0xff] }
 0x217   : > { %v733_v22 = vmul.f32 %v1891_v19, %v731_v20 }
 0x219   : > { %v735_v24 = vrot.slane %v733_v22, 7  ;;  %v759_v27 = vrot.slane %v733_v22, 1  ;;  %v755_v1 = vmul.f32 %v1117_v28, %v733_v22 }
 0x21b   : > { %v736_v30 = vsel %vm560_vm1, %v734_v23, %v735_v24  ;;  %v737_v31 = vsel %vm560_vm1, %v735_v24, %v734_v23  ;;  %v761_v32 = vsel %vm591_vm3, %v759_v27, %v758_v26  ;;  %v760_v35 = vsel %vm591_vm3, %v758_v26, %v759_v27  ;;  %v1125_v27 = vld [vmem:[%s1982_s12] ss:$0 sm:$0xff] }
 0x21c   : > { %v738_v33 = vsel %vm563_vm2, %v737_v31, 0.0  ;;  %v746_v34 = vmul.f32 %v1116_v25, %v736_v30  ;;  %v763_v36 = vsel %vm595_vm4, %v761_v32, 0.0  ;;  %v769_v42 = vmul.f32 %v1118_v29, %v760_v35 }
 0x21d   : > { %v745_v37 = vmul.f32 %v1116_v25, %v738_v33  ;;  %v770_v39 = vmul.f32 %v1118_v29, %v763_v36 }
 0x21e   : > { %v757_v40 = vadd.f32 %v755_v1, %v746_v34 }
 0x21f   : > { %v756_v41 = vadd.f32 %v754_v38, %v745_v37 }
 0x220   : > { %v772_v43 = vadd.f32 %v770_v39, %v757_v40 }
 0x221   : > { %v771_v44 = vadd.f32 %v769_v42, %v756_v41 }
 0x223   : > { %v773_v45 = vpack.c.bf16 %v772_v43, %v771_v44 }
 0x225   : > { %1153 = vmatmul.mubr.msk.bf16.vlgmr.msra.gmra.mxu1 %vm635_vm5, %v773_v45 }
 0x22d   : > { %s1157_s15 = spop %1156 }
 0x22e   : > { %v912_v35 = vstv %s1157_s15 }
 0x2e5   : > { %v834_v3 = vpop.f32.mrf.mxu1 }
 0x2e6   : > { %v835_v47 = vadd.f32 %v1119_v46, %v834_v3 }
 0x2e7   : > { %v1154_v48 = vpop.f32.mrf.mxu1 }
 0x2e8   : > { %v841_v6 = vmax.f32 %v835_v47, 0.0 }
 0x2e9   : > { %v837_v49 = vpop.f32.mrf.mxu1 }
 0x2ea   : > { %v838_v50 = vadd.f32 %v1119_v46, %v837_v49  ;;  %v843_v51 = vsel %vm635_vm5, %v841_v6, 0.0  ;;  %v851_v52 = vmul.f32 %v841_v6, %v841_v6 }
 0x2eb   : > { %844 = vadd.xlane.f32.xlu0 %v843_v51  ;;  %v1155_v53 = vpop.f32.mrf.mxu1 }
 0x2ec   : > { %v842_v54 = vmax.f32 %v838_v50, 0.0  ;;  %v853_v55 = vsel %vm635_vm5, %v851_v52, 0.0 }
 0x2ee   : > { %v846_v56 = vsel %vm635_vm5, %v842_v54, 0.0  ;;  %v852_v57 = vmul.f32 %v842_v54, %v842_v54 }
 0x2ef   : > { %854 = vadd.xlane.f32.xlu0 %v853_v55  ;;  %847 = vadd.xlane.f32.xlu1 %v846_v56 }
 0x2f0   : > { %v856_v58 = vsel %vm635_vm5, %v852_v57, 0.0 }
 0x2f3   : > { %857 = vadd.xlane.f32.xlu1 %v856_v58 }
 0x374   : > { %v845_v60 = vpop.xlane.xlu0 %844 }
 0x375   : > { %v849_v61 = vmul.f32 0.03125, %v845_v60 }
 0x377   : > { %v861_v0 = vmul.f32 %v849_v61, %v849_v61  ;;  %v867_v15 = vsub.f32 %v841_v6, %v849_v61 }
 0x378   : > { %v855_v62 = vpop.xlane.xlu0 %854  ;;  %v848_v63 = vpop.xlane.xlu1 %847 }
 0x379   : > { %v859_v2 = vmul.f32 0.03125, %v855_v62  ;;  %v850_v4 = vmul.f32 0.03125, %v848_v63 }
 0x37b   : > { %v863_v5 = vsub.f32 %v859_v2, %v861_v0  ;;  %v862_v9 = vmul.f32 %v850_v4, %v850_v4  ;;  %v868_v22 = vsub.f32 %v842_v54, %v850_v4 }
 0x37c   : > { %v858_v7 = vpop.xlane.xlu1 %857 }
 0x37d   : > { %v865_v8 = vmax.f32 %v863_v5, 0.0  ;;  %v860_v10 = vmul.f32 0.03125, %v858_v7 }
 0x37f   : > { %v869_v11 = vadd.f32 1e-12, %v865_v8  ;;  %v864_v12 = vsub.f32 %v860_v10, %v862_v9 }
 0x381   : > { %1278 = vrsqrt.f32 %v869_v11  ;;  %v866_v13 = vmax.f32 %v864_v12, 0.0 }
 0x383   : > { %v870_v14 = vadd.f32 1e-12, %v866_v13 }
 0x385   : > { %1280 = vrsqrt.f32 %v870_v14 }
 0x38e   : > { %v1279_v16 = vpop.eup %1278 }
 0x38f   : > { %v873_v20 = vmul.f32 %v1279_v16, %v867_v15 }
 0x391   : > { %v882_v23 = vmul.f32 %v1123_v18, %v873_v20 }
 0x392   : > { %v1281_v24 = vpop.eup %1280 }
 0x393   : > { %v891_v25 = vadd.f32 %v1124_v21, %v882_v23  ;;  %v874_v26 = vmul.f32 %v1281_v24, %v868_v22 }
 0x395   : > { %v893_v28 = vmul.f32 %v1888_v17, %v891_v25  ;;  %v883_v29 = vmul.f32 %v1123_v18, %v874_v26 }
 0x397   : > { %v902_v30 = vmul.f32 %v1125_v27, %v893_v28  ;;  %v892_v31 = vadd.f32 %v1124_v21, %v883_v29 }
 0x399   : > { %v904_v1 = vsel %vm635_vm5, %v902_v30, 0.0  ;;  %v894_v32 = vmul.f32 %v1891_v19, %v892_v31 }
 0x39a   : > { %905 = vadd.xlane.f32.xlu0 %v904_v1 }
 0x39b   : > { %v903_v33 = vmul.f32 %v1125_v27, %v894_v32 }
 0x39d   : > { %v907_v34 = vsel %vm635_vm5, %v903_v33, 0.0 }
 0x39e   : > { %908 = vadd.xlane.f32.xlu1 %v907_v34 }
 0x423   : > { %v906_v36 = vpop.xlane.xlu0 %905 }
 0x424   : > { %v913_v37 = vadd.f32 %v912_v35, %v906_v36 }
 0x426   : > { %915 = vxpose.xlu0.b32.start [1/2] (short) (narrow) %v913_v37, 8 }
 0x427   : > { %v909_v17 = vpop.xlane.xlu1 %908 }
 0x428   : > { %v914_v38 = vadd.f32 %v912_v35, %v909_v17 }
 0x42a   : > { %916 = vxpose.xlu0.b32.end [2/2] (short) (narrow) %v914_v38, 8 }
 0x4a2   : > { %v931_v19 = vpop.trf.xlu0 }
 0x4a3   : > { %948 = vst.msk [vmem:[%s541_s4] sm:$0x1] %vm947_vm8, %v931_v19 }
 0x4a4   : > { %1487 = shalt.err (!%p1484_p6)
}
 0x4a5   : > { %s1488_s17 = scalar_lea.hbm %s1933_s24, 16  ;;  %s1492_s13 = scalar_lea.hbm %s1983_s14, 32 }
 0x4a6   : > { %p1489_p10 = scmp.ne.s32.totalorder %s1933_s24, %s1488_s17  ;;  %p1493_p4 = scmp.lt.s32.totalorder %s1933_s24, %s1983_s14 }
 0x4a7   : > { %p1494_p13 = scmp.lt.s32.totalorder %s1492_s13, %s1488_s17 }
 0x4a8   : > { %p1490_p11 = pnand %p1489_p10, %p2022_p5 }
 0x4a9   : > { %p1495_p0 = por %p1494_p13, %p1493_p4 }
 0x4aa   : > { %p1491_p12 = pneg %p1490_p11 }
 0x4ac   : > { %p1496_p2 = pnand %p1495_p0, %p1491_p12 }
 0x4ae   : > { %1499 = shalt.err (!%p1496_p2)
}
 0x4af   : > { %1184 = dma.vmem_to_hbm [thread:$0]  (%p2022_p5), %s963_s5, 16, %s1933_s24, %s950_s30  }
 0x4b0 PF: > { %s974_s4 = sand.u32 1, %s1540_s18   ;;  %p2023_p8 = scmp.ne.s32.totalorder %s2010_s2, 0 }
 0x4b1   : > { %p2024_p9 = scmp.ge.s32.totalorder %s1552_s20, 2  ;;  %s975_s23 = scalar_lea.sflag [#allocation7], %s974_s4 }
 0x4b3   : > { %p1210_p1 = pnand %p2024_p9, %p2023_p8 }
 0x4b5   : > { %p1211_p3 = pneg %p1210_p1 }
 0x4b7   : > { %1535 = dma.done.wait (%p1211_p3), %s975_s23, 16  }
 0x4b8   : > { %1537 = vsyncadd (%p1211_p3), %s975_s23, 4294967280  ;;  %p36_p7 = scmp.ge.s32.totalorder %s1751_s28, 4   ;;  %s2025_s18 = smov %s1544_s19 }
 0x4b9   : > { %s2026_s19 = smov %s1548_s0  ;;  %s2027_s0 = smov %s1762_s25 }
 0x4ba   : > { %s2028_s20 = smov %s1751_s28  ;;  %38 = sbr.rel (!%p36_p7) target bundleno = 19 (0x13), region = 141 }
 0x4bf   :  { %979 = vsyncpa [#allocation6], 1 }
 0x4c0   :  { %981 = vsyncpa [#allocation6 + $0x1], 1 }
 0x4c1   :  { %982 = vsyncpa [#allocation9], 1 }
 0x4c2   :  { %983 = vsyncpa [#allocation12], 1 }
 0x4c3   :  { %984 = vsyncpa [#allocation15], 1 }
 0x4c4   :  { %985 = vsyncpa [#allocation7], 1 }
 0x4c5   :  { %987 = vsyncpa [#allocation7 + $0x1], 1 }

</bundles_post_ra>
